<compile_context>
chip_gen: v6e
topology: v6e:2x2x1
jax: 0.10.0
libtpu: 0.0.40
codegen_flags: <defaults>
</compile_context>

<pallas_src>
import math

import jax
import jax.numpy as jnp
from jax.experimental import pallas as pl
from jax.experimental.pallas import tpu as pltpu


# ---------------------------------------------------------------------------
# Kernels
# ---------------------------------------------------------------------------

def _bcast_full_kernel(p_ref, o_ref):
    # Single-invocation path (tiny outputs).
    # p_ref: (num_layers, 1, feat)   o_ref: (num_layers, batch, feat)
    o_ref[...] = jnp.broadcast_to(p_ref[...], o_ref.shape)


def _bcast_resident_kernel(p_ref, o_ref):
    # Grid path, whole prompt resident in VMEM.
    # p_ref: (num_layers, 1, feat)   o_ref: (bb, feat)
    layer = pl.program_id(0)
    o_ref[...] = jnp.broadcast_to(p_ref[layer], o_ref.shape)


def _bcast_blocked_kernel(p_ref, o_ref):
    # Grid path, per-layer prompt block (fallback for very large prompts).
    # p_ref: (1, feat)               o_ref: (bb, feat)
    o_ref[...] = jnp.broadcast_to(p_ref[...], o_ref.shape)


# ---------------------------------------------------------------------------
# Wrapper
# ---------------------------------------------------------------------------

# ~2 MiB output blocks: measured to hit ~85% of the HBM write roofline while
# staying far below v5e's 16 MiB default scoped VMEM (2x double-buffered).
_TARGET_BLOCK_BYTES = 2 << 20
# Below this total output size the kernel is pure per-step overhead: collapse
# to a single invocation.
_SINGLE_STEP_MAX_BYTES = 2 << 20
# Keep the full prompt VMEM-resident across the grid if it is at most this big.
_RESIDENT_PROMPT_MAX_BYTES = 4 << 20


def momentum_prompt_forward(prompt, batch_size, *,
                            target_block_bytes=_TARGET_BLOCK_BYTES,
                            single_step_max_bytes=_SINGLE_STEP_MAX_BYTES,
                            resident_prompt_max_bytes=_RESIDENT_PROMPT_MAX_BYTES):
    """Pallas implementation of MomentumPrompt.forward(x)['batched_prompt'].

    prompt: (num_layers, *inner)  e.g. (num_layers, 2, length, embed_dim)
    returns: (num_layers, batch_size, *inner)
    """
    num_layers = prompt.shape[0]
    inner = prompt.shape[1:]
    feat = math.prod(inner)
    itemsize = jnp.dtype(prompt.dtype).itemsize

    # Lane-dense flatten: one trailing feature axis (unmasked vst for aligned
    # feat; production feat = 2*length*embed_dim is a multiple of 128).
    p_flat = prompt.reshape(num_layers, 1, feat)

    prompt_bytes = num_layers * feat * itemsize
    out_bytes = num_layers * batch_size * feat * itemsize
    out_full_shape = (num_layers, batch_size) + inner

    cost = pl.CostEstimate(flops=0, transcendentals=0,
                           bytes_accessed=prompt_bytes + out_bytes)

    # --- tiny-problem path: one invocation, no grid ------------------------
    if out_bytes <= single_step_max_bytes:
        out_flat = pl.pallas_call(
            _bcast_full_kernel,
            out_shape=jax.ShapeDtypeStruct(
                (num_layers, batch_size, feat), prompt.dtype),
            cost_estimate=cost,
        )(p_flat)
        return out_flat.reshape(out_full_shape)

    # --- grid path ----------------------------------------------------------
    # dtype-aware sublane multiple: 8 for 4-byte, 16 for 2-byte, 32 for 1-byte.
    sublane = max(8, 32 // itemsize)
    row_bytes = feat * itemsize

    bb = (target_block_bytes // row_bytes) // sublane * sublane
    bb = max(sublane, bb)
    bb = min(bb, batch_size)
    # TODO(synk): if a single row (feat*itemsize) ever exceeds the block
    # budget, the feature axis would need tiling as well; prompt rows in this
    # module are at most a few hundred KiB so this is not implemented.

    grid = (num_layers, pl.cdiv(batch_size, bb))

    out_block_bytes = bb * row_bytes

    if prompt_bytes <= resident_prompt_max_bytes:
        # Whole prompt resident in VMEM; constant block index -> fetched once.
        kernel = _bcast_resident_kernel
        in_spec = pl.BlockSpec((num_layers, 1, feat), lambda l, b: (0, 0, 0))
        in_block_bytes = prompt_bytes
    else:
        kernel = _bcast_blocked_kernel
        in_spec = pl.BlockSpec((None, 1, feat), lambda l, b: (l, 0, 0))
        in_block_bytes = row_bytes

    out_spec = pl.BlockSpec((None, bb, feat), lambda l, b: (l, b, 0))

    # Live VMEM ~= 2 * (out block) + 2 * (in block); add generous headroom.
    vmem_limit = min(128 << 20,
                     2 * out_block_bytes + 2 * in_block_bytes + (8 << 20))

    out_flat = pl.pallas_call(
        kernel,
        out_shape=jax.ShapeDtypeStruct(
            (num_layers, batch_size, feat), prompt.dtype),
        grid=grid,
        in_specs=[in_spec],
        out_specs=out_spec,
        compiler_params=pltpu.CompilerParams(
            dimension_semantics=("parallel", "parallel"),
            vmem_limit_bytes=vmem_limit,
        ),
        cost_estimate=cost,
    )(p_flat)

    return out_flat.reshape(out_full_shape)


# ---------------------------------------------------------------------------
# Module (forward path only)
# ---------------------------------------------------------------------------

class MomentumPromptJax:
    """Minimal JAX port of MomentumPrompt (forward path only)."""

    def __init__(self, length=5, embed_dim=32, prompt_init="uniform",
                 num_layers=5, use_prefix_tune_for_e_prompt=False,
                 num_heads=-1, momentum=0.99, key=None):
        self.length = length
        self.embed_dim = embed_dim
        self.num_layers = num_layers
        self.momentum = momentum
        self.use_prefix_tune_for_e_prompt = use_prefix_tune_for_e_prompt
        if use_prefix_tune_for_e_prompt:
            assert embed_dim % num_heads == 0
            shape = (num_layers, 2, length, num_heads, embed_dim // num_heads)
        else:
            shape = (num_layers, 2, length, embed_dim)
        if prompt_init == "zero":
            self.prompt = jnp.zeros(shape, jnp.float32)
        else:  # 'uniform' -> uniform_(-1, 1), deterministic
            if key is None:
                key = jax.random.PRNGKey(0)
            self.prompt = jax.random.uniform(
                key, shape, jnp.float32, minval=-1.0, maxval=1.0
            )
        # TODO(synk): `old_prompt` / after_task momentum EMA is training-time
        # bookkeeping, not part of the forward hot path; not kernelized.

    def forward(self, x_embed):
        batch = x_embed.shape[0]
        return {"batched_prompt": momentum_prompt_forward(self.prompt, batch)}


# ---------------------------------------------------------------------------
# Self-test
# ---------------------------------------------------------------------------

if __name__ == "__main__":
    key = jax.random.PRNGKey(0)
    k_prompt, k_x = jax.random.split(key)

    # Small shapes: batch=2, seq=8, embed_dim=32, length=5, num_layers=5.
    module = MomentumPromptJax(length=5, embed_dim=32, num_layers=5,
                               key=k_prompt)
    x_embed = jax.random.normal(k_x, (2, 8, 32), jnp.float32)

    out = module.forward(x_embed)
    batched_prompt = jax.block_until_ready(out["batched_prompt"])

    ref = jnp.broadcast_to(
        module.prompt[:, None], (5, x_embed.shape[0], 2, 5, 32)
    )
    assert batched_prompt.shape == (5, 2, 2, 5, 32)
    assert batched_prompt.dtype == jnp.float32
    assert jnp.array_equal(batched_prompt, ref)

    # Also exercise the tiled grid path (forced small blocks) with a batch
    # that is NOT a multiple of the chunk, to cover partial-block masking.
    batch2 = 10
    out2 = momentum_prompt_forward(
        module.prompt, batch2,
        target_block_bytes=4096,      # -> bb = 8 (f32 sublane multiple)
        single_step_max_bytes=0,      # force the grid path
    )
    out2 = jax.block_until_ready(out2)
    ref2 = jnp.broadcast_to(module.prompt[:, None], (5, batch2, 2, 5, 32))
    assert out2.shape == (5, batch2, 2, 5, 32)
    assert jnp.array_equal(out2, ref2)

    print("KERNEL_OK")
</pallas_src>

<mosaic_0001>
module attributes {stable_mosaic.version = 11 : i64} {
  func.func @_bcast_full_kernel(%arg0: memref<5x1x320xf32, #tpu.memory_space<vmem>>, %arg1: memref<5x2x320xf32, #tpu.memory_space<vmem>>) attributes {dimension_semantics = [], scalar_prefetch = 0 : i64, scratch_operands = 0 : i64, tpu.core_type = #tpu.core_type<tc>} {
    %c0 = arith.constant 0 : index
    %c0_0 = arith.constant 0 : index
    %c0_1 = arith.constant 0 : index
    %0 = vector.load %arg0[%c0, %c0_0, %c0_1] : memref<5x1x320xf32, #tpu.memory_space<vmem>>, vector<5x1x320xf32>
    %1 = vector.shape_cast %0 : vector<5x1x320xf32> to vector<5x1x320xf32>
    %2 = vector.broadcast %1 : vector<5x1x320xf32> to vector<5x2x320xf32>
    %c0_2 = arith.constant 0 : index
    %c0_3 = arith.constant 0 : index
    %c0_4 = arith.constant 0 : index
    %3 = vector.load %arg1[%c0_2, %c0_3, %c0_4] : memref<5x2x320xf32, #tpu.memory_space<vmem>>, vector<5x2x320xf32>
    tpu.vector_store %arg1[%c0_2, %c0_3, %c0_4], %2 {strides = array<i32>} : memref<5x2x320xf32, #tpu.memory_space<vmem>>, vector<5x2x320xf32>,
    return
  }
}

</mosaic_0001>

<bundles_post_ra>
// kernel: tpu_custom_call.1
= control target key start
LH: loop header
LB: loop body
LE: loop exit
PB: predicated region body
PF: predicated region fallthrough
CT: control target
= control target key end

     0   :  { %6 = vsyncpa [#allocation3], 0  ;;  %s296_s0 = inlined_call_operand.hbm [shape: f32[5,1,320], index: 0, kind: input, shape index: {}]   ;;  %s297_s1 = inlined_call_operand.hbm [shape: f32[5,2,320], index: 1, kind: output, shape index: {}]  }
   0x1   :  { %7 = vsyncpa [#allocation4], 0  ;;  %s256_s6 = smov [#allocation2]  }
   0x2   :  { %s13_s7 = sshll.u32 %s256_s6, 4  ;;  %s14_s7 = int_to_ptr.vmem [resolvable:$true] %s13_s7 }
   0x3   :  { %s220_s8 = scalar_lea.vmem %s14_s7, 240  ;;  %s224_s9 = scalar_lea.vmem %s14_s7, 256 }
   0x4   :  { %p221_p0 = scmp.ne.s32.totalorder %s14_s7, %s220_s8  ;;  %p225_p1 = scmp.lt.s32.totalorder %s14_s7, %s14_s7 }
   0x5   :  { %p226_p2 = scmp.lt.s32.totalorder %s224_s9, %s220_s8 }
   0x7   :  { %p227_p3 = por %p226_p2, %p225_p1 }
   0x9   :  { %p228_p4 = pnand %p227_p3, %p221_p0 }
   0xb   :  { %231 = shalt.err (!%p228_p4)
}
   0xc   :  { %s257_s10 = smov 48   ;;  %s258_s11 = smov 3  }
   0xd   :  { %19 = dma.hbm_to_vmem [thread:$0]  %s296_s0, 240, %s14_s7, [#allocation3], %s257_s10, %s257_s10, %s258_s11  }
   0xe   :  { %252 = dma.done.wait [#allocation3], 240  }
   0xf   :  { %253 = vsyncadd [#allocation3], 4294967056  ;;  %v33_v0 = vlaneseq  ;;  %v259_v1 = vmov 1983009808   ;;  %vm178_vm0 = vcmask 1041408   ;;  %vm179_vm1 = vcmask 1043458  }
  0x10   :  { %v95_v2 = vunpack.c.l.s4 %v259_v1  ;;  %vm181_vm2 = vcmask 521220   ;;  %v23_v9 = vld [vmem:[#allocation2] sm:$0x7]  ;;  %v24_v10 = vld [vmem:[#allocation2 + $0x3] sm:$0x7]  ;;  %vm180_vm3 = vmor %vm179_vm1, %vm178_vm0  ;;  %s260_s0 = smov [#allocation5]  }
  0x11   :  { %v34_v3 = vshrl.u32 %v33_v0, 7  ;;  %v25_v11 = vld [vmem:[#allocation2 + $0x6] sm:$0x7]  ;;  %v26_v16 = vld [vmem:[#allocation2 + $0x9] sm:$0x7]  ;;  %vm279_vm4 = vmor %vm181_vm2, %vm180_vm3  ;;  %s193_s14 = sshll.u32 %s260_s0, 4  ;;  %s194_s14 = int_to_ptr.vmem [resolvable:$true] %s193_s14 }
  0x12   :  { %v96_v4 = vunpack.c.0.s8 %v95_v2  ;;  %v27_v21 = vld [vmem:[#allocation2 + $0xc] sm:$0x7]  ;;  %s232_s15 = scalar_lea.vmem %s194_s14, 480  ;;  %p237_p6 = scmp.lt.s32.totalorder %s194_s14, %s194_s14 }
  0x13   :  { %v35_v5 = vsub.s32 0, %v34_v3  ;;  %v39_v6 = vsub.s32 1, %v34_v3  ;;  %v43_v7 = vsub.s32 2, %v34_v3  ;;  %p233_p5 = scmp.ne.s32.totalorder %s194_s14, %s232_s15  ;;  %p238_p7 = scmp.lt.s32.totalorder %s232_s15, %s232_s15 }
  0x14   :  { %v99_v8 = vsub.s32 %v96_v4, %v34_v3 }
  0x15   :  { %v36_v12 = vrot.slane %v23_v9, %v35_v5  ;;  %v40_v13 = vrot.slane %v23_v9, %v39_v6  ;;  %v44_v14 = vrot.slane %v23_v9, %v43_v7  ;;  %v48_v15 = vrot.slane %v24_v10, %v35_v5  ;;  %p239_p8 = por %p238_p7, %p237_p6 }
  0x16   :  { %v52_v17 = vrot.slane %v24_v10, %v39_v6  ;;  %v56_v18 = vrot.slane %v24_v10, %v43_v7  ;;  %v60_v19 = vrot.slane %v25_v11, %v35_v5  ;;  %v64_v20 = vrot.slane %v25_v11, %v39_v6 }
  0x17   :  { %v93_v22 = vcombine.low %v36_v12, %v40_v13  ;;  %v107_v23 = vrot.slane %v44_v14, %v99_v8  ;;  %v68_v24 = vrot.slane %v25_v11, %v43_v7  ;;  %v72_v25 = vrot.slane %v26_v16, %v35_v5  ;;  %p240_p9 = pnand %p239_p8, %p233_p5 }
  0x18   :  { %v109_v26 = vcombine.low %v48_v15, %v52_v17  ;;  %v123_v27 = vrot.slane %v56_v18, %v99_v8  ;;  %v125_v28 = vcombine.low %v60_v19, %v64_v20  ;;  %v76_v29 = vrot.slane %v26_v16, %v39_v6 }
  0x19   :  { %v100_v30 = vrot.slane %v93_v22, %v99_v8  ;;  %v139_v31 = vrot.slane %v68_v24, %v99_v8  ;;  %v80_v32 = vrot.slane %v26_v16, %v43_v7  ;;  %v84_v33 = vrot.slane %v27_v21, %v35_v5 }
  0x1a   :  { %v116_v35 = vrot.slane %v109_v26, %v99_v8  ;;  %v132_v36 = vrot.slane %v125_v28, %v99_v8  ;;  %v141_v37 = vcombine.low %v72_v25, %v76_v29  ;;  %v88_v38 = vrot.slane %v27_v21, %v39_v6 }
  0x1b   :  { %v108_v39 = vcombine.low %v100_v30, %v107_v23  ;;  %v155_v40 = vrot.slane %v80_v32, %v99_v8  ;;  %v92_v41 = vrot.slane %v27_v21, %v43_v7 }
  0x1c   :  { %v124_v42 = vcombine.low %v116_v35, %v123_v27  ;;  %v140_v43 = vcombine.low %v132_v36, %v139_v31  ;;  %v148_v44 = vrot.slane %v141_v37, %v99_v8  ;;  %v157_v45 = vcombine.low %v84_v33, %v88_v38 }
  0x1d   :  { %183 = vst.msk [vmem:[#allocation5] sm:$0x3f] %vm279_vm4, %v108_v39  ;;  %v171_v46 = vrot.slane %v92_v41, %v99_v8 }
  0x1e   :  { %184 = vst.msk [vmem:[#allocation5 + $0x6] sm:$0x3f] %vm279_vm4, %v124_v42  ;;  %185 = vst.msk [vmem:[#allocation5 + $0xc] sm:$0x3f] %vm279_vm4, %v140_v43  ;;  %v156_v47 = vcombine.low %v148_v44, %v155_v40  ;;  %v164_v48 = vrot.slane %v157_v45, %v99_v8 }
  0x20   :  { %186 = vst.msk [vmem:[#allocation5 + $0x12] sm:$0x3f] %vm279_vm4, %v156_v47  ;;  %v172_v49 = vcombine.low %v164_v48, %v171_v46 }
  0x22   :  { %187 = vst.msk [vmem:[#allocation5 + $0x18] sm:$0x3f] %vm279_vm4, %v172_v49 }
  0x23   :  { %243 = shalt.err (!%p240_p9)
}
  0x24   :  { %s261_s16 = smov 96   ;;  %s262_s17 = smov 6  }
  0x25   :  { %199 = dma.vmem_to_hbm [thread:$0]  %s194_s14, 480, %s297_s1, [#allocation4], %s261_s16, %s261_s16, %s262_s17  }
  0x26   :  { %254 = dma.done.wait [#allocation4], 480  }
  0x27   :  { %255 = vsyncadd [#allocation4], 4294966816 }
  0x28   :  { %203 = vsyncpa [#allocation3], 1 }
  0x29   :  { %204 = vsyncpa [#allocation4], 1 }

</bundles_post_ra>
